<compile_context>
chip_gen: v5e
topology: v5e:2x2
jax: 0.10.0
libtpu: 0.0.40
codegen_flags: <defaults>
</compile_context>

<pallas_src>
import jax
import jax.numpy as jnp
from jax.experimental import pallas as pl
from jax.experimental.pallas import tpu as pltpu

LANE = 128          # lane width; padded hidden dim
HIDDEN = 24         # true hidden width of the module
TB_MAX = 2048       # max batch rows per grid step


def _round_up(n, m):
    return (n + m - 1) // m * m


def actor_kernel(x_ref, w1_ref, b1_ref, w2_ref, b2_ref, o_ref):
    # Two MXU matmuls + VPU relu / bias adds, fused in one kernel invocation.
    x = x_ref[...]                                                 # (TB, n_states)
    h = jnp.dot(x, w1_ref[...], preferred_element_type=jnp.float32) + b1_ref[...]
    h = jnp.maximum(h, 0.0)                                        # ReLU, (TB, 128)
    out = jnp.dot(h, w2_ref[...], preferred_element_type=jnp.float32) + b2_ref[...]
    # Store only the valid action columns: the padded columns never leave
    # VMEM, so HBM writeback is just n_actions * 4 bytes per row.
    o_ref[...] = out[:, : o_ref.shape[1]].astype(o_ref.dtype)


def pad_params(w1, b1, w2, b2):
    """One-time zero-padding of the tiny feature dims.

    w1: (n_states, 24)  -> (n_states, 128)
    b1: (1, 24)         -> (1, 128)
    w2: (24, n_actions) -> (128, round_up(n_actions, 8))
    b2: (1, n_actions)  -> (1, round_up(n_actions, 8))

    Zero padding is mathematically inert: padded hidden units are relu(0)=0
    and padded output columns are 0 (and never stored to HBM anyway).
    """
    n_states, hidden = w1.shape
    n_actions = w2.shape[1]
    out_pad = _round_up(n_actions, 8)
    w1p = jnp.zeros((n_states, LANE), jnp.float32).at[:, :hidden].set(w1)
    b1p = jnp.zeros((1, LANE), jnp.float32).at[:, :hidden].set(b1)
    w2p = jnp.zeros((LANE, out_pad), jnp.float32).at[:hidden, :n_actions].set(w2)
    b2p = jnp.zeros((1, out_pad), jnp.float32).at[:, :n_actions].set(b2)
    return w1p, b1p, w2p, b2p


def actornet_forward(x, padded_params, n_actions):
    """x: (B, n_states) float32; padded_params from pad_params()."""
    w1p, b1p, w2p, b2p = padded_params
    B, n_states = x.shape
    out_pad = w2p.shape[1]

    # Pad batch only to a multiple of 8 sublanes (usually a no-op) — the grid
    # handles any ragged tail relative to the tile via a partial final block.
    bp = _round_up(max(B, 1), 8)
    if bp != B:
        x = jnp.pad(x, ((0, bp - B), (0, 0)))

    # Batch tile: big enough to amortize per-step overhead, but guarantee
    # >=2 grid steps once there is enough work so the parallel batch axis can
    # shard across both TensorCores on v7x.
    if bp <= 512:
        tb = bp
    else:
        tb = min(TB_MAX, _round_up(-(-bp // 2), 8))
    grid = (pl.cdiv(bp, tb),)

    # Advisory cost hint for XLA's scheduler around the custom call.
    flops = 2 * bp * (n_states * LANE + LANE * out_pad)
    bytes_accessed = (bp * 4 * (n_states + n_actions)
                      + 4 * (w1p.size + b1p.size + w2p.size + b2p.size))
    cost = pl.CostEstimate(flops=int(flops), transcendentals=0,
                           bytes_accessed=int(bytes_accessed))

    out = pl.pallas_call(
        actor_kernel,
        out_shape=jax.ShapeDtypeStruct((bp, n_actions), jnp.float32),
        grid_spec=pltpu.PrefetchScalarGridSpec(
            num_scalar_prefetch=0,
            grid=grid,
            in_specs=[
                # activations: tiled over batch, auto double-buffered
                pl.BlockSpec((tb, n_states), lambda i: (i, 0)),
                # weights / biases: full blocks, VMEM-resident across the grid
                pl.BlockSpec((n_states, LANE), lambda i: (0, 0)),
                pl.BlockSpec((1, LANE), lambda i: (0, 0)),
                pl.BlockSpec((LANE, out_pad), lambda i: (0, 0)),
                pl.BlockSpec((1, out_pad), lambda i: (0, 0)),
            ],
            # narrow (n_actions-wide) output block: only valid lanes hit HBM
            out_specs=pl.BlockSpec((tb, n_actions), lambda i: (i, 0)),
        ),
        compiler_params=pltpu.CompilerParams(
            # batch axis is embarrassingly parallel -> megacore sharding on v7x
            dimension_semantics=("parallel",),
            # explicit scoped-VMEM budget so the large tile stays viable on v5e
            vmem_limit_bytes=32 * 1024 * 1024,
        ),
        cost_estimate=cost,
    )(x, w1p, b1p, w2p, b2p)

    # Drop the (rare) batch padding; no column slice needed anymore.
    return out if bp == B else out[:B]


def init_params(key, n_states, n_actions, hidden=HIDDEN):
    """Mirrors the module's __init__: weights ~ Normal(0, 0.1); biases use
    PyTorch Linear's default Uniform(-1/sqrt(fan_in), 1/sqrt(fan_in))."""
    k1, k2, k3, k4 = jax.random.split(key, 4)
    w1 = 0.1 * jax.random.normal(k1, (n_states, hidden), dtype=jnp.float32)
    w2 = 0.1 * jax.random.normal(k2, (hidden, n_actions), dtype=jnp.float32)
    bound1 = 1.0 / jnp.sqrt(jnp.float32(n_states))
    bound2 = 1.0 / jnp.sqrt(jnp.float32(hidden))
    b1 = jax.random.uniform(k3, (1, hidden), jnp.float32, -bound1, bound1)
    b2 = jax.random.uniform(k4, (1, n_actions), jnp.float32, -bound2, bound2)
    return w1, b1, w2, b2


def reference_forward(x, w1, b1, w2, b2):
    h = jnp.maximum(x @ w1 + b1, 0.0)
    return h @ w2 + b2


if __name__ == "__main__":
    n_states = 4     # e.g. CartPole observation dim
    n_actions = 2
    batch = 8        # small demo batch (kernel also scales to large B via the grid)

    key = jax.random.PRNGKey(0)
    kx, kp = jax.random.split(key)
    x = jax.random.normal(kx, (batch, n_states), dtype=jnp.float32)
    w1, b1, w2, b2 = init_params(kp, n_states, n_actions)

    padded = pad_params(w1, b1, w2, b2)   # one-time weight padding
    out = actornet_forward(x, padded, n_actions)
    out = jax.block_until_ready(out)

    ref = reference_forward(x, w1, b1, w2, b2)
    assert out.shape == (batch, n_actions)
    assert jnp.allclose(out, ref, atol=1e-5, rtol=1e-5)

    # Sanity-check the multi-step path: B=1000 gives 2 grid steps with a
    # partial final block (no host-side padding of x to the tile size).
    big_b = 1000
    xb = jax.random.normal(jax.random.PRNGKey(1), (big_b, n_states), jnp.float32)
    out_big = jax.block_until_ready(actornet_forward(xb, padded, n_actions))
    ref_big = reference_forward(xb, w1, b1, w2, b2)
    assert out_big.shape == (big_b, n_actions)
    assert jnp.allclose(out_big, ref_big, atol=1e-5, rtol=1e-5)

    # Exercise the non-multiple-of-8 batch + >2 grid-step path.
    odd_b = 4100
    xo = jax.random.normal(jax.random.PRNGKey(2), (odd_b, n_states), jnp.float32)
    out_odd = jax.block_until_ready(actornet_forward(xo, padded, n_actions))
    ref_odd = reference_forward(xo, w1, b1, w2, b2)
    assert out_odd.shape == (odd_b, n_actions)
    assert jnp.allclose(out_odd, ref_odd, atol=1e-5, rtol=1e-5)

    print("KERNEL_OK")
</pallas_src>

<mosaic_0001>
module attributes {stable_mosaic.version = 11 : i64} {
  func.func @actor_kernel(%arg0: i32, %arg1: memref<8x4xf32, #tpu.memory_space<vmem>>, %arg2: memref<4x128xf32, #tpu.memory_space<vmem>>, %arg3: memref<1x128xf32, #tpu.memory_space<vmem>>, %arg4: memref<128x8xf32, #tpu.memory_space<vmem>>, %arg5: memref<1x8xf32, #tpu.memory_space<vmem>>, %arg6: memref<8x2xf32, #tpu.memory_space<vmem>>) attributes {dimension_semantics = [#tpu.dimension_semantics<parallel>], iteration_bounds = array<i64: 1>, scalar_prefetch = 0 : i64, scratch_operands = 0 : i64, tpu.core_type = #tpu.core_type<tc>, window_params = [{transform_indices = @transform_0, window_bounds = array<i64: 8, 4>}, {pipeline_mode = #tpu.pipeline_mode<synchronous>, transform_indices = @transform_1, window_bounds = array<i64: 4, 128>}, {pipeline_mode = #tpu.pipeline_mode<synchronous>, transform_indices = @transform_2, window_bounds = array<i64: 1, 128>}, {pipeline_mode = #tpu.pipeline_mode<synchronous>, transform_indices = @transform_3, window_bounds = array<i64: 128, 8>}, {pipeline_mode = #tpu.pipeline_mode<synchronous>, transform_indices = @transform_4, window_bounds = array<i64: 1, 8>}, {transform_indices = @transform_5, window_bounds = array<i64: 8, 2>}]} {
    %c0 = arith.constant 0 : index
    %c0_0 = arith.constant 0 : index
    %0 = vector.load %arg1[%c0, %c0_0] : memref<8x4xf32, #tpu.memory_space<vmem>>, vector<8x4xf32>
    %c0_1 = arith.constant 0 : index
    %c0_2 = arith.constant 0 : index
    %1 = vector.load %arg2[%c0_1, %c0_2] : memref<4x128xf32, #tpu.memory_space<vmem>>, vector<4x128xf32>
    %cst = arith.constant dense<0.000000e+00> : vector<8x128xf32>
    %2 = tpu.matmul %0, %1, %cst {dimension_numbers = #tpu.dot_dimension_numbers<[1], [0], [0], [1], [0, 0, 1, 1], [], []>} : vector<8x4xf32>, vector<4x128xf32>, vector<8x128xf32> -> vector<8x128xf32>
    %c0_3 = arith.constant 0 : index
    %c0_4 = arith.constant 0 : index
    %3 = vector.load %arg3[%c0_3, %c0_4] : memref<1x128xf32, #tpu.memory_space<vmem>>, vector<1x128xf32>
    %4 = vector.broadcast %3 : vector<1x128xf32> to vector<8x128xf32>
    %5 = arith.addf %2, %4 : vector<8x128xf32>
    %cst_5 = arith.constant 0.000000e+00 : f32
    %6 = vector.broadcast %cst_5 : f32 to vector<8x128xf32>
    %7 = arith.maximumf %5, %6 : vector<8x128xf32>
    %c0_6 = arith.constant 0 : index
    %c0_7 = arith.constant 0 : index
    %8 = vector.load %arg4[%c0_6, %c0_7] : memref<128x8xf32, #tpu.memory_space<vmem>>, vector<128x8xf32>
    %cst_8 = arith.constant dense<0.000000e+00> : vector<8x8xf32>
    %9 = tpu.matmul %7, %8, %cst_8 {dimension_numbers = #tpu.dot_dimension_numbers<[1], [0], [0], [1], [0, 0, 1, 1], [], []>} : vector<8x128xf32>, vector<128x8xf32>, vector<8x8xf32> -> vector<8x8xf32>
    %c0_9 = arith.constant 0 : index
    %c0_10 = arith.constant 0 : index
    %10 = vector.load %arg5[%c0_9, %c0_10] : memref<1x8xf32, #tpu.memory_space<vmem>>, vector<1x8xf32>
    %11 = vector.broadcast %10 : vector<1x8xf32> to vector<8x8xf32>
    %12 = arith.addf %9, %11 : vector<8x8xf32>
    %13 = vector.extract_strided_slice %12 {offsets = [0, 0], sizes = [8, 2], strides = [1, 1]} : vector<8x8xf32> to vector<8x2xf32>
    %c0_11 = arith.constant 0 : index
    %c0_12 = arith.constant 0 : index
    %14 = vector.load %arg6[%c0_11, %c0_12] : memref<8x2xf32, #tpu.memory_space<vmem>>, vector<8x2xf32>
    tpu.vector_store %arg6[%c0_11, %c0_12], %13 {strides = array<i32>} : memref<8x2xf32, #tpu.memory_space<vmem>>, vector<8x2xf32>,
    return
  }
  func.func @transform_0(%arg0: i32) -> (i32, i32) {
    %c0_i32 = arith.constant 0 : i32
    %c0_i32_0 = arith.constant 0 : i32
    return %arg0, %c0_i32 : i32, i32
  }
  func.func @transform_1(%arg0: i32) -> (i32, i32) {
    %c0_i32 = arith.constant 0 : i32
    %c0_i32_0 = arith.constant 0 : i32
    %c0_i32_1 = arith.constant 0 : i32
    return %c0_i32, %c0_i32_0 : i32, i32
  }
  func.func @transform_2(%arg0: i32) -> (i32, i32) {
    %c0_i32 = arith.constant 0 : i32
    %c0_i32_0 = arith.constant 0 : i32
    %c0_i32_1 = arith.constant 0 : i32
    return %c0_i32, %c0_i32_0 : i32, i32
  }
  func.func @transform_3(%arg0: i32) -> (i32, i32) {
    %c0_i32 = arith.constant 0 : i32
    %c0_i32_0 = arith.constant 0 : i32
    %c0_i32_1 = arith.constant 0 : i32
    return %c0_i32, %c0_i32_0 : i32, i32
  }
  func.func @transform_4(%arg0: i32) -> (i32, i32) {
    %c0_i32 = arith.constant 0 : i32
    %c0_i32_0 = arith.constant 0 : i32
    %c0_i32_1 = arith.constant 0 : i32
    return %c0_i32, %c0_i32_0 : i32, i32
  }
  func.func @transform_5(%arg0: i32) -> (i32, i32) {
    %c0_i32 = arith.constant 0 : i32
    %c0_i32_0 = arith.constant 0 : i32
    return %arg0, %c0_i32 : i32, i32
  }
}

</mosaic_0001>

<bundles_post_ra>
// kernel: tpu_custom_call.1
= control target key start
LH: loop header
LB: loop body
LE: loop exit
PB: predicated region body
PF: predicated region fallthrough
CT: control target
= control target key end

     0   :  { %vm30_vm0 = vcmask 1043456   ;;  %vm26_vm1 = vcmask 31744   ;;  %vm95_vm2 = vcmask 15360   ;;  %s198_s1 = inlined_call_operand.vmem [shape: f32[4,128], index: 1, kind: input, shape index: {}]   ;;  %s199_s0 = inlined_call_operand.vmem [shape: f32[8,4], index: 0, kind: input, shape index: {}]   ;;  %s200_s3 = inlined_call_operand.vmem [shape: f32[128,8], index: 3, kind: input, shape index: {}]   ;;  %s201_s2 = inlined_call_operand.vmem [shape: f32[1,128], index: 2, kind: input, shape index: {}]   ;;  %s202_s4 = inlined_call_operand.vmem [shape: f32[1,8], index: 4, kind: input, shape index: {}]   ;;  %s203_s5 = inlined_call_operand.vmem [shape: f32[8,2], index: 5, kind: output, shape index: {}]  }
   0x1   :  { %v21_v0 = vld [vmem:[%s198_s1] sm:$0xf]  ;;  %v70_v2 = vld [vmem:[%s200_s3 + $0x78] sm:$0xff]  ;;  %v69_v3 = vld [vmem:[%s200_s3 + $0x70] sm:$0xff] }
   0x2   :  { %v20_v1 = vld [vmem:[%s199_s0] sm:$0xff]  ;;  %101 = vmatpush.msk.msra.mxu0 %vm30_vm0, %v21_v0  ;;  %75 = vmatpush.msra.mxu1 %v70_v2  ;;  %v68_v4 = vld [vmem:[%s200_s3 + $0x68] sm:$0xff]  ;;  %v66_v6 = vld [vmem:[%s200_s3 + $0x58] sm:$0xff] }
   0x3   :  { %102 = vmatmul.msk.f32.vlgmr.msra.gmra.mxu0 %vm26_vm1, %v20_v1  ;;  %v67_v5 = vld [vmem:[%s200_s3 + $0x60] sm:$0xff]  ;;  %v65_v7 = vld [vmem:[%s200_s3 + $0x50] sm:$0xff]  ;;  %v64_v8 = vld [vmem:[%s200_s3 + $0x48] sm:$0xff] }
   0x4   :  { %76 = vmatpush.msra.mxu1 %v69_v3  ;;  %v63_v9 = vld [vmem:[%s200_s3 + $0x40] sm:$0xff]  ;;  %v62_v10 = vld [vmem:[%s200_s3 + $0x38] sm:$0xff]  ;;  %v61_v11 = vld [vmem:[%s200_s3 + $0x30] sm:$0xff] }
   0x5   :  { %v60_v12 = vld [vmem:[%s200_s3 + $0x28] sm:$0xff]  ;;  %v59_v13 = vld [vmem:[%s200_s3 + $0x20] sm:$0xff]  ;;  %v58_v14 = vld [vmem:[%s200_s3 + $0x18] sm:$0xff] }
   0x6   :  { %77 = vmatpush.msra.mxu1 %v68_v4  ;;  %v57_v15 = vld [vmem:[%s200_s3 + $0x10] sm:$0xff]  ;;  %v56_v16 = vld [vmem:[%s200_s3 + $0x8] sm:$0xff]  ;;  %v55_v17 = vld [vmem:[%s200_s3] sm:$0xff] }
   0x7   :  { %v103_v18 = vld [vmem:[%s201_s2] ss:$0 sm:$0xff] }
   0x8   :  { %78 = vmatpush.msra.mxu1 %v67_v5  ;;  %v104_v22 = vld [vmem:[%s202_s4] ss:$0 sm:$0xff] }
   0xa   :  { %79 = vmatpush.msra.mxu1 %v66_v6 }
   0xc   :  { %80 = vmatpush.msra.mxu1 %v65_v7 }
   0xe   :  { %81 = vmatpush.msra.mxu1 %v64_v8 }
  0x10   :  { %82 = vmatpush.msra.mxu1 %v63_v9 }
  0x12   :  { %83 = vmatpush.msra.mxu1 %v62_v10 }
  0x14   :  { %84 = vmatpush.msra.mxu1 %v61_v11 }
  0x16   :  { %85 = vmatpush.msra.mxu1 %v60_v12 }
  0x18   :  { %86 = vmatpush.msra.mxu1 %v59_v13 }
  0x1a   :  { %87 = vmatpush.msra.mxu1 %v58_v14 }
  0x1c   :  { %88 = vmatpush.msra.mxu1 %v57_v15 }
  0x1e   :  { %89 = vmatpush.msra.mxu1 %v56_v16 }
  0x20   :  { %90 = vmatpush.msra.mxu1 %v55_v17 }
  0x80   :  { %v51_v19 = vpop.f32.mrf.mxu0 }
  0x81   :  { %v52_v20 = vadd.f32 %v103_v18, %v51_v19 }
  0x83   :  { %v54_v21 = vmax.f32 %v52_v20, 0.0 }
  0x85   :  { %91 = vmatmul.f32.vlgmr.msra.gmra.mxu1 %v54_v21 }
 0x102   :  { %v92_v23 = vpop.f32.mrf.mxu1 }
 0x103   :  { %v93_v24 = vadd.f32 %v104_v22, %v92_v23 }
 0x105   :  { %96 = vst.msk [vmem:[%s203_s5] sm:$0xff] %vm95_vm2, %v93_v24 }

</bundles_post_ra>
